<compile_context>
chip_gen: v6e
topology: v6e:2x2x1
jax: 0.10.0
libtpu: 0.0.40
codegen_flags: <defaults>
</compile_context>

<pallas_src>
import functools

import jax
import jax.numpy as jnp
from jax.experimental import pallas as pl
from jax.experimental.pallas import tpu as pltpu


def _round_up(n, m):
    return ((n + m - 1) // m) * m


def _sublane_pack(dtype):
    # Sub-32-bit dtypes pack along sublanes: 8 rows for f32, 16 for bf16,
    # 32 for int8/fp8.  Keep block row counts a multiple of the packed tile.
    return max(8, 32 // max(1, jnp.dtype(dtype).itemsize))


def _norm_kernel(x_ref, alpha_ref, bias_ref, o_ref, *, eps, d_model, use_mxu):
    # x_ref: (tile_rows, d_model); alpha/bias: (1, d_model), already f32.
    x = x_ref[...].astype(jnp.float32)

    if use_mxu:
        # Narrow d_model: per-row cross-lane reductions would saturate the XLU
        # before HBM.  Offload the row sums to the (otherwise idle) MXU via a
        # matvec with a ones column; HIGHEST precision preserves f32 accuracy.
        ones = jnp.ones((d_model, 1), dtype=jnp.float32)
        row_sum = jnp.dot(x, ones,
                          precision=jax.lax.Precision.HIGHEST,
                          preferred_element_type=jnp.float32)
        mean = row_sum * jnp.float32(1.0 / d_model)
        xc = x - mean
        sq_sum = jnp.dot(xc * xc, ones,
                         precision=jax.lax.Precision.HIGHEST,
                         preferred_element_type=jnp.float32)
    else:
        mean = jnp.mean(x, axis=-1, keepdims=True)
        xc = x - mean
        sq_sum = jnp.sum(xc * xc, axis=-1, keepdims=True)

    # torch.Tensor.std defaults to the unbiased estimator (divide by d-1).
    var = sq_sum * jnp.float32(1.0 / max(d_model - 1, 1))
    std = jnp.sqrt(var)

    # Per-row reciprocal (tile_rows, 1) + VPU multiply instead of a full-tile
    # divide; exact reciprocal to preserve 1e-5 tolerance.
    inv = pl.reciprocal(std + jnp.float32(eps), approx=False)

    y = (xc * inv) * alpha_ref[...] + bias_ref[...]
    o_ref[...] = y.astype(o_ref.dtype)


def norm_forward(x, alpha, bias, eps=1e-6, *, tile_rows=None,
                 target_block_bytes=4 * 1024 * 1024,
                 min_grid_steps=4,
                 mxu_reduction_max_d=512,
                 buffer_count=None):
    """Pallas Norm forward.

    x: (..., d_model); alpha, bias: (d_model,)
    """
    orig_shape = x.shape
    d_model = orig_shape[-1]
    x2d = x.reshape(-1, d_model)
    n_rows = x2d.shape[0]
    itemsize = jnp.dtype(x.dtype).itemsize
    pack = _sublane_pack(x.dtype)

    if tile_rows is None:
        # ~4 MiB input blocks: keeps the fixed per-grid-step overhead small on
        # all of v5e/v6e/v7x while the double-buffered working set fits VMEM.
        tr = max(pack, target_block_bytes // max(1, d_model * itemsize))
        tr = max(pack, (int(tr) // pack) * pack)
        # Never larger than the (sublane-padded) row count.
        tr = min(tr, _round_up(n_rows, pack))
        # Keep >= min_grid_steps grid steps so the "parallel" axis can be
        # sharded across both TensorCores on v7x.
        tr = min(tr, _round_up(pl.cdiv(n_rows, min_grid_steps), pack))
        tile_rows = tr
    tile_rows = max(pack, _round_up(int(tile_rows), pack))

    # Tail handling: pad rows up to a multiple of tile_rows; padded (all-zero)
    # rows are well-defined (output = bias) and sliced away afterwards.
    n_rows_padded = _round_up(n_rows, tile_rows)
    if n_rows_padded != n_rows:
        x2d = jnp.pad(x2d, ((0, n_rows_padded - n_rows), (0, 0)))

    # Pre-cast params to f32 so the kernel performs no per-step casts; the
    # constant (0,0) index_map below keeps them DMA'd once.
    alpha2d = alpha.reshape(1, d_model).astype(jnp.float32)
    bias2d = bias.reshape(1, d_model).astype(jnp.float32)

    # VMEM budget: pipelined input + double-buffered output blocks, plus ~3
    # full-tile f32 intermediates (upcast / xc / y), plus fixed headroom.
    # Clamp to ~75% of physical VMEM so Mosaic keeps room for internal
    # scratch (~48 MiB on v7x, ~96 MiB on v5e/v6e).
    n_in_bufs = buffer_count if buffer_count is not None else 2
    block_bytes = tile_rows * d_model * itemsize
    f32_block_bytes = tile_rows * d_model * 4
    vmem_needed = ((n_in_bufs + 2) * block_bytes
                   + 3 * f32_block_bytes
                   + 8 * 1024 * 1024)
    try:
        info = pltpu.get_tpu_info()
        phys_vmem = int(getattr(info, "vmem_capacity_bytes", 64 * 1024 * 1024))
    except Exception:
        phys_vmem = 64 * 1024 * 1024
    vmem_limit = max(16 * 1024 * 1024,
                     min(int(vmem_needed), (phys_vmem * 3) // 4))

    use_mxu = d_model <= mxu_reduction_max_d

    x_spec_kwargs = {}
    if buffer_count is not None and buffer_count != 2:
        # Deeper input pipelining for chips with very short per-step DMAs
        # (v7x); off by default — enable after profiling shows exposed DMA.
        x_spec_kwargs["pipeline_mode"] = pl.Buffered(buffer_count)

    def _call(use_mxu_flag):
        kernel = functools.partial(_norm_kernel, eps=eps, d_model=d_model,
                                   use_mxu=use_mxu_flag)
        return pl.pallas_call(
            kernel,
            out_shape=jax.ShapeDtypeStruct((n_rows_padded, d_model), x.dtype),
            grid_spec=pltpu.PrefetchScalarGridSpec(
                num_scalar_prefetch=0,
                grid=(n_rows_padded // tile_rows,),
                in_specs=[
                    pl.BlockSpec((tile_rows, d_model), lambda i: (i, 0),
                                 **x_spec_kwargs),
                    pl.BlockSpec((1, d_model), lambda i: (0, 0)),
                    pl.BlockSpec((1, d_model), lambda i: (0, 0)),
                ],
                out_specs=pl.BlockSpec((tile_rows, d_model), lambda i: (i, 0)),
            ),
            compiler_params=pltpu.CompilerParams(
                dimension_semantics=("parallel",),
                vmem_limit_bytes=int(vmem_limit),
            ),
        )(x2d, alpha2d, bias2d)

    if use_mxu:
        try:
            out = _call(True)
        except Exception:
            # Safety net: if the MXU matvec reduction fails to lower on some
            # toolchain, fall back to the XLU-reduction variant (same math).
            out = _call(False)
    else:
        out = _call(False)

    if n_rows_padded != n_rows:
        out = out[:n_rows]
    return out.reshape(orig_shape)


def norm_reference(x, alpha, bias, eps=1e-6):
    """Pure-JAX reference mirroring the PyTorch forward exactly."""
    d = x.shape[-1]
    mean = jnp.mean(x, axis=-1, keepdims=True)
    xc = x - mean
    var = jnp.sum(xc * xc, axis=-1, keepdims=True) / max(d - 1, 1)  # unbiased
    std = jnp.sqrt(var)
    return alpha * xc / (std + eps) + bias


if __name__ == "__main__":
    key = jax.random.PRNGKey(0)
    batch, seq, d_model = 2, 8, 128

    x = jax.random.normal(key, (batch, seq, d_model), dtype=jnp.float32)
    # Deterministic parameter init matching nn.Parameter(torch.ones/zeros).
    alpha = jnp.ones((d_model,), dtype=jnp.float32)
    bias = jnp.zeros((d_model,), dtype=jnp.float32)

    out = jax.block_until_ready(norm_forward(x, alpha, bias))
    ref = norm_reference(x, alpha, bias)
    assert out.shape == x.shape
    assert jnp.allclose(out, ref, atol=1e-5, rtol=1e-5), "mismatch vs reference"

    # Exercise the non-divisible / tail-padding path with a ragged row count.
    key2 = jax.random.PRNGKey(1)
    x2 = jax.random.normal(key2, (3, 5, d_model), dtype=jnp.float32)
    out2 = jax.block_until_ready(norm_forward(x2, alpha, bias))
    ref2 = norm_reference(x2, alpha, bias)
    assert out2.shape == x2.shape
    assert jnp.allclose(out2, ref2, atol=1e-5, rtol=1e-5), "mismatch (padded path)"

    print("KERNEL_OK")
</pallas_src>

<mosaic_0001>
module attributes {stable_mosaic.version = 11 : i64} {
  func.func @_norm_kernel(%arg0: i32, %arg1: memref<8x128xf32, #tpu.memory_space<vmem>>, %arg2: memref<1x128xf32, #tpu.memory_space<vmem>>, %arg3: memref<1x128xf32, #tpu.memory_space<vmem>>, %arg4: memref<8x128xf32, #tpu.memory_space<vmem>>) attributes {dimension_semantics = [#tpu.dimension_semantics<parallel>], iteration_bounds = array<i64: 2>, scalar_prefetch = 0 : i64, scratch_operands = 0 : i64, tpu.core_type = #tpu.core_type<tc>, window_params = [{transform_indices = @transform_0, window_bounds = array<i64: 8, 128>}, {pipeline_mode = #tpu.pipeline_mode<synchronous>, transform_indices = @transform_1, window_bounds = array<i64: 1, 128>}, {pipeline_mode = #tpu.pipeline_mode<synchronous>, transform_indices = @transform_2, window_bounds = array<i64: 1, 128>}, {transform_indices = @transform_3, window_bounds = array<i64: 8, 128>}]} {
    %c0 = arith.constant 0 : index
    %c0_0 = arith.constant 0 : index
    %0 = vector.load %arg1[%c0, %c0_0] : memref<8x128xf32, #tpu.memory_space<vmem>>, vector<8x128xf32>
    %cst = arith.constant 1.000000e+00 : f32
    %1 = vector.broadcast %cst : f32 to vector<128x1xf32>
    %cst_1 = arith.constant dense<0.000000e+00> : vector<8x1xf32>
    %2 = tpu.matmul %0, %1, %cst_1 {dimension_numbers = #tpu.dot_dimension_numbers<[1], [0], [0], [1], [0, 0, 1, 1], [], []>, precision = #tpu.contract_precision<fp32>} : vector<8x128xf32>, vector<128x1xf32>, vector<8x1xf32> -> vector<8x1xf32>
    %cst_2 = arith.constant 7.812500e-03 : f32
    %3 = vector.broadcast %cst_2 : f32 to vector<8x1xf32>
    %4 = arith.mulf %2, %3 : vector<8x1xf32>
    %5 = vector.broadcast %4 : vector<8x1xf32> to vector<8x128xf32>
    %6 = arith.subf %0, %5 : vector<8x128xf32>
    %7 = arith.mulf %6, %6 : vector<8x128xf32>
    %cst_3 = arith.constant dense<0.000000e+00> : vector<8x1xf32>
    %8 = tpu.matmul %7, %1, %cst_3 {dimension_numbers = #tpu.dot_dimension_numbers<[1], [0], [0], [1], [0, 0, 1, 1], [], []>, precision = #tpu.contract_precision<fp32>} : vector<8x128xf32>, vector<128x1xf32>, vector<8x1xf32> -> vector<8x1xf32>
    %cst_4 = arith.constant 0.00787401571 : f32
    %9 = vector.broadcast %cst_4 : f32 to vector<8x1xf32>
    %10 = arith.mulf %8, %9 : vector<8x1xf32>
    %11 = math.sqrt %10 : vector<8x1xf32>
    %cst_5 = arith.constant 9.99999997E-7 : f32
    %12 = vector.broadcast %cst_5 : f32 to vector<8x1xf32>
    %13 = arith.addf %11, %12 : vector<8x1xf32>
    %14 = tpu.reciprocal %13 : vector<8x1xf32> -> vector<8x1xf32>
    %15 = vector.broadcast %14 : vector<8x1xf32> to vector<8x128xf32>
    %16 = arith.mulf %6, %15 : vector<8x128xf32>
    %c0_6 = arith.constant 0 : index
    %c0_7 = arith.constant 0 : index
    %17 = vector.load %arg2[%c0_6, %c0_7] : memref<1x128xf32, #tpu.memory_space<vmem>>, vector<1x128xf32>
    %18 = vector.broadcast %17 : vector<1x128xf32> to vector<8x128xf32>
    %19 = arith.mulf %16, %18 : vector<8x128xf32>
    %c0_8 = arith.constant 0 : index
    %c0_9 = arith.constant 0 : index
    %20 = vector.load %arg3[%c0_8, %c0_9] : memref<1x128xf32, #tpu.memory_space<vmem>>, vector<1x128xf32>
    %21 = vector.broadcast %20 : vector<1x128xf32> to vector<8x128xf32>
    %22 = arith.addf %19, %21 : vector<8x128xf32>
    %c0_10 = arith.constant 0 : index
    %c0_11 = arith.constant 0 : index
    %23 = vector.load %arg4[%c0_10, %c0_11] : memref<8x128xf32, #tpu.memory_space<vmem>>, vector<8x128xf32>
    tpu.vector_store %arg4[%c0_10, %c0_11], %22 {strides = array<i32>} : memref<8x128xf32, #tpu.memory_space<vmem>>, vector<8x128xf32>,
    return
  }
  func.func @transform_0(%arg0: i32) -> (i32, i32) {
    %c0_i32 = arith.constant 0 : i32
    %c0_i32_0 = arith.constant 0 : i32
    return %arg0, %c0_i32 : i32, i32
  }
  func.func @transform_1(%arg0: i32) -> (i32, i32) {
    %c0_i32 = arith.constant 0 : i32
    %c0_i32_0 = arith.constant 0 : i32
    %c0_i32_1 = arith.constant 0 : i32
    return %c0_i32, %c0_i32_0 : i32, i32
  }
  func.func @transform_2(%arg0: i32) -> (i32, i32) {
    %c0_i32 = arith.constant 0 : i32
    %c0_i32_0 = arith.constant 0 : i32
    %c0_i32_1 = arith.constant 0 : i32
    return %c0_i32, %c0_i32_0 : i32, i32
  }
  func.func @transform_3(%arg0: i32) -> (i32, i32) {
    %c0_i32 = arith.constant 0 : i32
    %c0_i32_0 = arith.constant 0 : i32
    return %arg0, %c0_i32 : i32, i32
  }
}

module attributes {stable_mosaic.version = 11 : i64} {
  func.func @_norm_kernel(%arg0: i32, %arg1: memref<8x128xf32, #tpu.memory_space<vmem>>, %arg2: memref<1x128xf32, #tpu.memory_space<vmem>>, %arg3: memref<1x128xf32, #tpu.memory_space<vmem>>, %arg4: memref<8x128xf32, #tpu.memory_space<vmem>>) attributes {dimension_semantics = [#tpu.dimension_semantics<parallel>], iteration_bounds = array<i64: 2>, scalar_prefetch = 0 : i64, scratch_operands = 0 : i64, tpu.core_type = #tpu.core_type<tc>, window_params = [{transform_indices = @transform_0, window_bounds = array<i64: 8, 128>}, {pipeline_mode = #tpu.pipeline_mode<synchronous>, transform_indices = @transform_1, window_bounds = array<i64: 1, 128>}, {pipeline_mode = #tpu.pipeline_mode<synchronous>, transform_indices = @transform_2, window_bounds = array<i64: 1, 128>}, {transform_indices = @transform_3, window_bounds = array<i64: 8, 128>}]} {
    %c0 = arith.constant 0 : index
    %c0_0 = arith.constant 0 : index
    %0 = vector.load %arg1[%c0, %c0_0] : memref<8x128xf32, #tpu.memory_space<vmem>>, vector<8x128xf32>
    %cst = arith.constant dense<0.000000e+00> : vector<8xf32>
    %1 = vector.multi_reduction <add>, %0, %cst [1] : vector<8x128xf32> to vector<8xf32>
    %2 = vector.shape_cast %1 : vector<8xf32> to vector<8x1xf32>
    %cst_1 = arith.constant 1.280000e+02 : f32
    %3 = vector.broadcast %cst_1 : f32 to vector<8x1xf32>
    %4 = arith.divf %2, %3 : vector<8x1xf32>
    %5 = vector.broadcast %4 : vector<8x1xf32> to vector<8x128xf32>
    %6 = arith.subf %0, %5 : vector<8x128xf32>
    %7 = arith.mulf %6, %6 : vector<8x128xf32>
    %cst_2 = arith.constant dense<0.000000e+00> : vector<8xf32>
    %8 = vector.multi_reduction <add>, %7, %cst_2 [1] : vector<8x128xf32> to vector<8xf32>
    %9 = vector.shape_cast %8 : vector<8xf32> to vector<8x1xf32>
    %cst_3 = arith.constant 0.00787401571 : f32
    %10 = vector.broadcast %cst_3 : f32 to vector<8x1xf32>
    %11 = arith.mulf %9, %10 : vector<8x1xf32>
    %12 = math.sqrt %11 : vector<8x1xf32>
    %cst_4 = arith.constant 9.99999997E-7 : f32
    %13 = vector.broadcast %cst_4 : f32 to vector<8x1xf32>
    %14 = arith.addf %12, %13 : vector<8x1xf32>
    %15 = tpu.reciprocal %14 : vector<8x1xf32> -> vector<8x1xf32>
    %16 = vector.broadcast %15 : vector<8x1xf32> to vector<8x128xf32>
    %17 = arith.mulf %6, %16 : vector<8x128xf32>
    %c0_5 = arith.constant 0 : index
    %c0_6 = arith.constant 0 : index
    %18 = vector.load %arg2[%c0_5, %c0_6] : memref<1x128xf32, #tpu.memory_space<vmem>>, vector<1x128xf32>
    %19 = vector.broadcast %18 : vector<1x128xf32> to vector<8x128xf32>
    %20 = arith.mulf %17, %19 : vector<8x128xf32>
    %c0_7 = arith.constant 0 : index
    %c0_8 = arith.constant 0 : index
    %21 = vector.load %arg3[%c0_7, %c0_8] : memref<1x128xf32, #tpu.memory_space<vmem>>, vector<1x128xf32>
    %22 = vector.broadcast %21 : vector<1x128xf32> to vector<8x128xf32>
    %23 = arith.addf %20, %22 : vector<8x128xf32>
    %c0_9 = arith.constant 0 : index
    %c0_10 = arith.constant 0 : index
    %24 = vector.load %arg4[%c0_9, %c0_10] : memref<8x128xf32, #tpu.memory_space<vmem>>, vector<8x128xf32>
    tpu.vector_store %arg4[%c0_9, %c0_10], %23 {strides = array<i32>} : memref<8x128xf32, #tpu.memory_space<vmem>>, vector<8x128xf32>,
    return
  }
  func.func @transform_0(%arg0: i32) -> (i32, i32) {
    %c0_i32 = arith.constant 0 : i32
    %c0_i32_0 = arith.constant 0 : i32
    return %arg0, %c0_i32 : i32, i32
  }
  func.func @transform_1(%arg0: i32) -> (i32, i32) {
    %c0_i32 = arith.constant 0 : i32
    %c0_i32_0 = arith.constant 0 : i32
    %c0_i32_1 = arith.constant 0 : i32
    return %c0_i32, %c0_i32_0 : i32, i32
  }
  func.func @transform_2(%arg0: i32) -> (i32, i32) {
    %c0_i32 = arith.constant 0 : i32
    %c0_i32_0 = arith.constant 0 : i32
    %c0_i32_1 = arith.constant 0 : i32
    return %c0_i32, %c0_i32_0 : i32, i32
  }
  func.func @transform_3(%arg0: i32) -> (i32, i32) {
    %c0_i32 = arith.constant 0 : i32
    %c0_i32_0 = arith.constant 0 : i32
    return %arg0, %c0_i32 : i32, i32
  }
}

</mosaic_0001>

<bundles_post_ra>
// kernel: tpu_custom_call.1
= control target key start
LH: loop header
LB: loop body
LE: loop exit
PB: predicated region body
PF: predicated region fallthrough
CT: control target
= control target key end

     0   :  { %8 = vsyncpa [#allocation3], 0  ;;  %s2127_s0 = inlined_call_operand.hbm [shape: f32[16,128], index: 0, kind: input, shape index: {}]   ;;  %s2128_s1 = inlined_call_operand.vmem [shape: f32[1,128], index: 1, kind: input, shape index: {}]   ;;  %s2129_s2 = inlined_call_operand.vmem [shape: f32[1,128], index: 2, kind: input, shape index: {}]   ;;  %s2130_s3 = inlined_call_operand.hbm [shape: f32[16,128], index: 3, kind: output, shape index: {}]  }
   0x1   :  { %10 = vsyncpa [#allocation3 + $0x1], 0 }
   0x2   :  { %11 = vsyncpa [#allocation4], 0 }
   0x3   :  { %13 = vsyncpa [#allocation4 + $0x1], 0  ;;  %s1721_s12 = smov 0   ;;  %s1723_s13 = smov 0  }
   0x4   :  { %s1725_s14 = smov 0   ;;  %s1727_s15 = smov 0  }
   0x5 LB: > { %s1742_s16 = sadd.s32 4294967295, %s1693_s15   ;;  %s1178_s17 = sadd.s32 4294967294, %s1693_s15   ;;  %s1693_s15 = sphi %s1727_s15, %s2147_s15   ;;  %s1689_s14 = sphi %s1725_s14, %s2146_s14   ;;  %s1685_s13 = sphi %s1723_s13, %s2145_s13   ;;  %s1681_s12 = sphi %s1721_s12, %s2144_s12  }
   0x6   : > { %s1746_s18 = sadd.s32 1, %s1693_s15   ;;  %s26_s19 = sadd.s32 1, %s1689_s14 }
   0x7   : > { %s23_s20 = ssub.s32 %s1693_s15, %s1746_s18  ;;  %p33_p0 = scmp.ne.s32.totalorder %s1689_s14, %s1685_s13 }
   0x8   : > { %p24_p1 = scmp.eq.s32.totalorder %s23_s20, 0  ;;  %p34_p2 = scmp.eq.s32.totalorder %s1693_s15, 0 }
   0x9   : > { %p39_p3 = scmp.ne.s32.totalorder %s1685_s13, %s1681_s12  ;;  %p40_p4 = scmp.eq.s32.totalorder %s1742_s16, 0 }
   0xa   : > { %s1758_s21 = scalar_select %p24_p1, %s1689_s14, %s26_s19  }
   0xb   : > { %p1760_p5 = por %p34_p2, %p33_p0  ;;  %p1764_p6 = por %p40_p4, %p39_p3 }
   0xc   : > { %p105_p7 = scmp.eq.s32.totalorder %s1742_s16, 1  ;;  %p111_p8 = scmp.eq.s32.totalorder %s1178_s17, 1 }
   0xd   : > { %s2134_s23 = scalar_select %p1764_p6, 1, 0 }
   0xe   : > { %p1558_p10 = scmp.lt.s32.totalorder %s1693_s15, 2  ;;  %p1771_p11 = por %p105_p7, %p33_p0 }
   0xf   : > { %p1775_p12 = por %p111_p8, %p39_p3  ;;  %s137_s26 = sand.u32 1, %s1689_s14  }
  0x10   : > { %s2135_s24 = scalar_select %p1771_p11, 1, 0 }
  0x11   : > { %s2136_s25 = scalar_select %p1775_p12, 1, 0 }
  0x12   : > { %s1182_s27 = sshll.u32 %s1693_s15, 7  ;;  %s1181_s28 = sshll.u32 %s137_s26, 3 }
  0x13   : > { %s1784_s4 = scalar_lea.hbm %s2127_s0, %s1182_s27  ;;  %s141_s5 = scalar_lea.vmem [#allocation2], %s1181_s28 }
  0x14   : > { %s148_s6 = sshll.u32 %s141_s5, 4  ;;  %p1788_p13 = pnand %p1558_p10, %p1760_p5  ;;  %s1792_s6 = int_to_ptr.vmem [resolvable:$true] %s148_s6 }
  0x15   : > { %s138_s8 = scalar_lea.sflag [#allocation3], %s137_s26  ;;  %s1601_s9 = scalar_lea.hbm %s1784_s4, 128 }
  0x16   : > { %p1602_p2 = scmp.ne.s32.totalorder %s1784_s4, %s1601_s9  ;;  %p1603_p3 = pneg %p1788_p13 }
  0x17   : > { %s1606_s17 = scalar_lea.hbm %s2127_s0, 256  ;;  %p1607_p5 = scmp.lt.s32.totalorder %s1784_s4, %s2127_s0 }
  0x18   : > { %p1604_p4 = pnand %p1603_p3, %p1602_p2  ;;  %p1608_p8 = scmp.lt.s32.totalorder %s1606_s17, %s1601_s9 }
  0x1a   : > { %p1605_p7 = pneg %p1604_p4  ;;  %p1609_p10 = por %p1608_p8, %p1607_p5 }
  0x1c   : > { %p1610_p9 = pnand %p1609_p10, %p1605_p7 }
  0x1e   : > { %1613 = shalt.err (!%p1610_p9)
}
  0x1f   : > { %s1614_s22 = scalar_lea.vmem %s1792_s6, 128  ;;  %s1695_s26 = smov [#allocation2]  }
  0x20   : > { %p1615_p0 = scmp.ne.s32.totalorder %s1792_s6, %s1614_s22  ;;  %s1619_s27 = sshll.u32 %s1695_s26, 4  ;;  %s1620_s27 = int_to_ptr.vmem [resolvable:$false] %s1619_s27 }
  0x21   : > { %s1621_s28 = scalar_lea.vmem %s1620_s27, 256  ;;  %p1622_p4 = scmp.lt.s32.totalorder %s1792_s6, %s1620_s27 }
  0x22   : > { %p1617_p1 = pnand %p1615_p0, %p1603_p3  ;;  %p1623_p12 = scmp.lt.s32.totalorder %s1621_s28, %s1614_s22 }
  0x24   : > { %p1618_p2 = pneg %p1617_p1  ;;  %p1624_p11 = por %p1623_p12, %p1622_p4 }
  0x26   : > { %p1625_p6 = pnand %p1624_p11, %p1618_p2 }
  0x28   : > { %1628 = shalt.err (!%p1625_p6)
}
  0x29   : > { %1553 = dma.hbm_to_vmem [thread:$0]  (!%p1788_p13), %s1784_s4, 128, %s1792_s6, %s138_s8  }
  0x2a   : > { %p2138_p9 = scmp.lt.s32.totalorder %s1693_s15, 3  ;;  %p2139_p7 = scmp.ge.s32.totalorder %s1693_s15, 1 }
  0x2c   : > { %p154_p0 = pnand %p2139_p7, %p2138_p9 }
  0x2d   : > { %s1819_s29 = sand.u32 (!%p154_p0), 1, %s1685_s13   ;;  %p2140_p6 = scmp.ne.s32.totalorder (!%p154_p0), %s2134_s23, 0 }
  0x2e   : > { %157 = sbr.rel (%p154_p0) target bundleno = 874 (0x36a), region = 32  ;;  %s1184_s30 = sshll.u32 (!%p154_p0), %s1819_s29, 3 }
  0x2f   : > { %s160_s5 = scalar_lea.sflag (!%p154_p0), [#allocation3], %s1819_s29  ;;  %s163_s7 = scalar_lea.vmem (!%p154_p0), [#allocation2], %s1184_s30 }
  0x33   : > { %1672 = dma.done.wait (%p2140_p6), %s160_s5, 128  }
  0x34   : > { %1674 = vsyncadd (%p2140_p6), %s160_s5, 4294967168  ;;  %v1696_v0 = vmov 0.0   ;;  %v1697_v1 = vmov 1.0   ;;  %vm1698_vm0 = vmmov 0   ;;  %v1843_v2 = vld [vmem:[%s163_s7] sm:$0xff]  ;;  %v1699_v8 = vmov 0  }
  0x35   : > { %1306 = vmatprep.subr.mxu0 %v1696_v0  ;;  %1346 = vmatprep.subr.mxu1 %v1696_v0  ;;  %v1847_v3 = vand.u32 4294901760, %v1843_v2  ;;  %v1186_v60 = vld [vmem:[%s2128_s1] ss:$0 sm:$0xff]  ;;  %s1189_s9 = sshll.u32 %s1742_s16, 7  ;;  %s185_s10 = scalar_lea.vmem [#allocation5], %s1184_s30 }
  0x36   : > { %1307 = vmatpush3.msra.mxu0 %v1697_v1  ;;  %1347 = vmatpush3.msra.mxu1 %v1696_v0  ;;  %v1187_v63 = vld [vmem:[%s2129_s2] ss:$0 sm:$0xff]  ;;  %s1108_s11 = sshll.u32 %s185_s10, 4  ;;  %s1106_s20 = scalar_lea.hbm %s2130_s3, %s1189_s9  ;;  %s1109_s11 = int_to_ptr.vmem [resolvable:$true] %s1108_s11 }
  0x37   : > { %1308 = vmatprep.subr.mxu0 %v1696_v0  ;;  %1348 = vmatprep.mubr.msk.f32.mxu1 %vm1698_vm0, %v1696_v0  ;;  %v1853_v4 = vsub.f32 %v1843_v2, %v1847_v3  ;;  %s1095_s22 = scalar_lea.sflag [#allocation4], %s1819_s29  ;;  %s1629_s26 = scalar_lea.vmem %s1109_s11, 128 }
  0x38   : > { %1309 = vmatpush3.msra.mxu0 %v1697_v1  ;;  %1351 = vmatprep.subr.mxu1 %v1696_v0  ;;  %p1630_p11 = scmp.ne.s32.totalorder %s1109_s11, %s1629_s26  ;;  %p2141_p12 = scmp.ne.s32.totalorder %s2135_s24, 0 }
  0x39   : > { %1310 = vmatprep.subr.mxu0 %v1696_v0  ;;  %1338 = vmatprep.mubr.msk.f32.mxu0 %vm1698_vm0, %v1696_v0  ;;  %v254_v5 = vand.u32 4294901760, %v1853_v4  ;;  %s1700_s27 = smov [#allocation5]  }
  0x3a   : > { %1311 = vmatpush3.msra.mxu0 %v1697_v1  ;;  %1349 = vmatmul.mubr.f32.vlgmr.msra.gmra.mxu1 %v1853_v4  ;;  %p1631_p13 = pnand %p1630_p11, %p2141_p12  ;;  %s1633_s28 = sshll.u32 %s1700_s27, 4  ;;  %s1634_s28 = int_to_ptr.vmem [resolvable:$false] %s1633_s28 }
  0x3b   : > { %1312 = vmatprep.subr.mxu0 %v1696_v0  ;;  %1352 = vmatpush3.msra.mxu1 %v1697_v1  ;;  %v255_v6 = vsub.f32 %v1853_v4, %v254_v5  ;;  %s1635_s16 = scalar_lea.vmem %s1634_s28, 256  ;;  %p1636_p3 = scmp.lt.s32.totalorder %s1109_s11, %s1634_s28 }
  0x3c   : > { %1313 = vmatpush3.msra.mxu0 %v1697_v1  ;;  %1353 = vmatprep.subr.mxu1 %v1696_v0  ;;  %p1632_p1 = pneg %p1631_p13  ;;  %p1637_p5 = scmp.lt.s32.totalorder %s1635_s16, %s1629_s26 }
  0x3d   : > { %1314 = vmatprep.subr.mxu0 %v1696_v0  ;;  %1354 = vmatpush3.msra.mxu1 %v1697_v1  ;;  %v256_v7 = vand.u32 4294901760, %v255_v6 }
  0x3e   : > { %1315 = vmatpush3.msra.mxu0 %v1697_v1  ;;  %1355 = vmatprep.subr.mxu1 %v1696_v0  ;;  %p1638_p8 = por %p1637_p5, %p1636_p3 }
  0x3f   : > { %1316 = vmatprep.subr.mxu0 %v1696_v0  ;;  %1356 = vmatpush3.msra.mxu1 %v1697_v1 }
  0x40   : > { %1317 = vmatpush3.msra.mxu0 %v1697_v1  ;;  %1357 = vmatprep.subr.mxu1 %v1696_v0  ;;  %p1639_p10 = pnand %p1638_p8, %p1632_p1 }
  0x41   : > { %1318 = vmatprep.subr.mxu0 %v1696_v0  ;;  %1358 = vmatpush3.msra.mxu1 %v1697_v1 }
  0x42   : > { %1319 = vmatpush3.msra.mxu0 %v1697_v1  ;;  %1359 = vmatprep.subr.mxu1 %v1696_v0 }
  0x43   : > { %1320 = vmatprep.subr.mxu0 %v1696_v0  ;;  %1360 = vmatpush3.msra.mxu1 %v1697_v1 }
  0x44   : > { %1321 = vmatpush3.msra.mxu0 %v1697_v1  ;;  %1361 = vmatprep.subr.mxu1 %v1696_v0 }
  0x45   : > { %1322 = vmatprep.subr.mxu0 %v1696_v0  ;;  %1362 = vmatpush3.msra.mxu1 %v1697_v1 }
  0x46   : > { %1323 = vmatpush3.msra.mxu0 %v1697_v1  ;;  %1363 = vmatprep.subr.mxu1 %v1696_v0 }
  0x47   : > { %1324 = vmatprep.subr.mxu0 %v1696_v0  ;;  %1364 = vmatpush3.msra.mxu1 %v1697_v1 }
  0x48   : > { %1325 = vmatpush3.msra.mxu0 %v1697_v1  ;;  %1365 = vmatprep.subr.mxu1 %v1696_v0 }
  0x49   : > { %1326 = vmatprep.subr.mxu0 %v1696_v0  ;;  %1366 = vmatpush3.msra.mxu1 %v1697_v1 }
  0x4a   : > { %1327 = vmatpush3.msra.mxu0 %v1697_v1  ;;  %1367 = vmatprep.subr.mxu1 %v1696_v0 }
  0x4b   : > { %1328 = vmatprep.subr.mxu0 %v1696_v0  ;;  %1368 = vmatpush3.msra.mxu1 %v1697_v1 }
  0x4c   : > { %1329 = vmatpush3.msra.mxu0 %v1697_v1  ;;  %1369 = vmatprep.subr.mxu1 %v1696_v0 }
  0x4d   : > { %1330 = vmatprep.subr.mxu0 %v1696_v0  ;;  %1370 = vmatpush3.msra.mxu1 %v1697_v1 }
  0x4e   : > { %1331 = vmatpush3.msra.mxu0 %v1697_v1  ;;  %1371 = vmatprep.subr.mxu1 %v1696_v0 }
  0x4f   : > { %1332 = vmatprep.subr.mxu0 %v1696_v0  ;;  %1372 = vmatpush3.msra.mxu1 %v1697_v1 }
  0x50   : > { %1333 = vmatpush3.msra.mxu0 %v1697_v1  ;;  %1373 = vmatprep.subr.mxu1 %v1696_v0 }
  0x51   : > { %1334 = vmatprep.subr.mxu0 %v1696_v0  ;;  %1374 = vmatpush3.msra.mxu1 %v1697_v1 }
  0x52   : > { %1335 = vmatpush3.msra.mxu0 %v1697_v1  ;;  %1375 = vmatprep.subr.mxu1 %v1696_v0 }
  0x53   : > { %1336 = vmatprep.subr.mxu0 %v1696_v0  ;;  %1376 = vmatpush3.msra.mxu1 %v1697_v1 }
  0x54   : > { %1337 = vmatpush3.msra.mxu0 %v1697_v1  ;;  %1377 = vmatprep.subr.mxu1 %v1696_v0 }
  0x55   : > { %1339 = vmatmul.mubr.f32.vlgmr.msra.gmra.mxu0 %v256_v7  ;;  %1341 = vmatprep.subr.mxu0 %v1696_v0 }
  0x56   : > { %1342 = vmatpush3.msra.mxu0 %v1696_v0  ;;  %1343 = vmatprep.mubr.msk.f32.mxu0 %vm1698_vm0, %v1696_v0 }
  0x57   : > { %1386 = vmatprep.subr.mxu0 %v1696_v0  ;;  %1378 = vmatpush3.msra.mxu1 %v1697_v1 }
  0x58   : > { %1379 = vmatprep.subr.mxu1 %v1696_v0  ;;  %1383 = vmatprep.mubr.msk.f32.mxu1 %vm1698_vm0, %v1696_v0 }
  0x59   : > { %1344 = vmatmul.mubr.f32.vlgmr.msra.gmra.mxu0 %v1847_v3  ;;  %1380 = vmatpush3.msra.mxu1 %v1697_v1 }
  0x5a   : > { %1387 = vmatpush3.msra.mxu0 %v1696_v0  ;;  %1388 = vmatprep.mubr.msk.f32.mxu0 %vm1698_vm0, %v1696_v0 }
  0x5b   : > { %1391 = vmatprep.subr.mxu0 %v1696_v0  ;;  %1381 = vmatprep.subr.mxu1 %v1696_v0 }
  0x5c   : > { %1382 = vmatpush3.msra.mxu1 %v1697_v1  ;;  %1596 = vset.pattern.permute.xlu0 %v1699_v8 }
  0x5d   : > { %1389 = vmatmul.mubr.f32.vlgmr.msra.gmra.mxu0 %v1847_v3  ;;  %1384 = vmatmul.mubr.f32.vlgmr.msra.gmra.mxu1 %v254_v5 }
  0x5e   : > { %1392 = vmatpush3.msra.mxu0 %v1697_v1  ;;  %1423 = vmatprep.mubr.msk.f32.mxu0 %vm1698_vm0, %v1696_v0 }
  0x5f   : > { %1393 = vmatprep.subr.mxu0 %v1696_v0  ;;  %1426 = vmatprep.subr.mxu1 %v1696_v0 }
  0x60   : > { %1394 = vmatpush3.msra.mxu0 %v1697_v1  ;;  %1427 = vmatpush3.msra.mxu1 %v1697_v1 }
  0x61   : > { %1395 = vmatprep.subr.mxu0 %v1696_v0  ;;  %1428 = vmatprep.subr.mxu1 %v1696_v0 }
  0x62   : > { %1396 = vmatpush3.msra.mxu0 %v1697_v1  ;;  %1429 = vmatpush3.msra.mxu1 %v1697_v1 }
  0x63   : > { %1397 = vmatprep.subr.mxu0 %v1696_v0  ;;  %1430 = vmatprep.subr.mxu1 %v1696_v0 }
  0x64   : > { %1398 = vmatpush3.msra.mxu0 %v1697_v1  ;;  %1431 = vmatpush3.msra.mxu1 %v1697_v1 }
  0x65   : > { %1399 = vmatprep.subr.mxu0 %v1696_v0  ;;  %1432 = vmatprep.subr.mxu1 %v1696_v0 }
  0x66   : > { %1400 = vmatpush3.msra.mxu0 %v1697_v1  ;;  %1433 = vmatpush3.msra.mxu1 %v1697_v1 }
  0x67   : > { %1401 = vmatprep.subr.mxu0 %v1696_v0  ;;  %1434 = vmatprep.subr.mxu1 %v1696_v0 }
  0x68   : > { %1402 = vmatpush3.msra.mxu0 %v1697_v1  ;;  %1435 = vmatpush3.msra.mxu1 %v1697_v1 }
  0x69   : > { %1403 = vmatprep.subr.mxu0 %v1696_v0  ;;  %1436 = vmatprep.subr.mxu1 %v1696_v0 }
  0x6a   : > { %1404 = vmatpush3.msra.mxu0 %v1697_v1  ;;  %1437 = vmatpush3.msra.mxu1 %v1697_v1 }
  0x6b   : > { %1405 = vmatprep.subr.mxu0 %v1696_v0  ;;  %1438 = vmatprep.subr.mxu1 %v1696_v0 }
  0x6c   : > { %1406 = vmatpush3.msra.mxu0 %v1697_v1  ;;  %1439 = vmatpush3.msra.mxu1 %v1697_v1 }
  0x6d   : > { %1407 = vmatprep.subr.mxu0 %v1696_v0  ;;  %1440 = vmatprep.subr.mxu1 %v1696_v0 }
  0x6e   : > { %1408 = vmatpush3.msra.mxu0 %v1697_v1  ;;  %1441 = vmatpush3.msra.mxu1 %v1697_v1 }
  0x6f   : > { %1409 = vmatprep.subr.mxu0 %v1696_v0  ;;  %1442 = vmatprep.subr.mxu1 %v1696_v0 }
  0x70   : > { %1410 = vmatpush3.msra.mxu0 %v1697_v1  ;;  %1443 = vmatpush3.msra.mxu1 %v1697_v1 }
  0x71   : > { %1411 = vmatprep.subr.mxu0 %v1696_v0  ;;  %1444 = vmatprep.subr.mxu1 %v1696_v0 }
  0x72   : > { %1412 = vmatpush3.msra.mxu0 %v1697_v1  ;;  %1445 = vmatpush3.msra.mxu1 %v1697_v1 }
  0x73   : > { %1413 = vmatprep.subr.mxu0 %v1696_v0  ;;  %1446 = vmatprep.subr.mxu1 %v1696_v0 }
  0x74   : > { %1414 = vmatpush3.msra.mxu0 %v1697_v1  ;;  %1447 = vmatpush3.msra.mxu1 %v1697_v1 }
  0x75   : > { %1415 = vmatprep.subr.mxu0 %v1696_v0  ;;  %1448 = vmatprep.subr.mxu1 %v1696_v0 }
  0x76   : > { %1416 = vmatpush3.msra.mxu0 %v1697_v1  ;;  %1449 = vmatpush3.msra.mxu1 %v1697_v1 }
  0x77   : > { %1417 = vmatprep.subr.mxu0 %v1696_v0  ;;  %1450 = vmatprep.subr.mxu1 %v1696_v0 }
  0x78   : > { %1418 = vmatpush3.msra.mxu0 %v1697_v1  ;;  %1451 = vmatpush3.msra.mxu1 %v1697_v1 }
  0x79   : > { %1419 = vmatprep.subr.mxu0 %v1696_v0  ;;  %1452 = vmatprep.subr.mxu1 %v1696_v0 }
  0x7a   : > { %1420 = vmatpush3.msra.mxu0 %v1697_v1  ;;  %1453 = vmatpush3.msra.mxu1 %v1697_v1 }
  0x7b   : > { %1421 = vmatprep.subr.mxu0 %v1696_v0  ;;  %1454 = vmatprep.subr.mxu1 %v1696_v0 }
  0x7c   : > { %1422 = vmatpush3.msra.mxu0 %v1697_v1  ;;  %1458 = vmatprep.mubr.msk.f32.mxu1 %vm1698_vm0, %v1696_v0 }
  0x7d   : > { %1424 = vmatmul.mubr.f32.vlgmr.msra.gmra.mxu0 %v1847_v3  ;;  %1461 = vmatprep.subr.mxu0 %v1696_v0 }
  0x7e   : > { %1462 = vmatpush3.msra.mxu0 %v1696_v0  ;;  %1463 = vmatprep.mubr.msk.f32.mxu0 %vm1698_vm0, %v1696_v0 }
  0x7f   : > { %1471 = vmatprep.subr.mxu0 %v1696_v0  ;;  %1455 = vmatpush3.msra.mxu1 %v1697_v1 }
  0x80   : > { %1456 = vmatprep.subr.mxu1 %v1696_v0 }
  0x81   : > { %1457 = vmatpush3.msra.mxu1 %v1697_v1 }
  0x82   : > { %1466 = vmatprep.subr.mxu1 %v1696_v0 }
  0xfa   : > { %v401_v9 = vpop.f32.mrf.mxu1 }
  0xfc   : > { %v1350_v10 = vpop.f32.mrf.mxu1 }
 0x115   : > { %v258_v11 = vpop.f32.mrf.mxu0 }
 0x117   : > { %v1340_v12 = vpop.f32.mrf.mxu0 }
 0x119   : > { %v329_v13 = vpop.f32.mrf.mxu0 }
 0x11a   : > { %v330_v19 = vadd.f32 %v329_v13, %v258_v11 }
 0x11b   : > { %v1345_v14 = vpop.f32.mrf.mxu0 }
 0x11c   : > { %v402_v20 = vadd.f32 %v401_v9, %v330_v19 }
 0x11d   : > { %v545_v15 = vpop.f32.mrf.mxu0  ;;  %v474_v17 = vpop.f32.mrf.mxu1 }
 0x11e   : > { %v475_v21 = vadd.f32 %v474_v17, %v402_v20 }
 0x11f   : > { %v1390_v16 = vpop.f32.mrf.mxu0  ;;  %v1385_v18 = vpop.f32.mrf.mxu1 }
 0x120   : > { %v546_v22 = vadd.f32 %v545_v15, %v475_v21 }
 0x13d   : > { %v616_v23 = vpop.f32.mrf.mxu0 }
 0x13e   : > { %v617_v24 = vadd.f32 %v616_v23, %v546_v22 }
 0x13f   : > { %v1425_v25 = vpop.f32.mrf.mxu0 }
 0x140   : > { %v620_v26 = vmul.f32 0.0078125, %v617_v24 }
 0x142   : > { %623 = vperm.xlu0 %1596, %v620_v26  }
 0x1bd   : > { %v624_v27 = vpop.permute.xlu0 %623 }
 0x1be   : > { %v1999_v28 = vsub.f32 %v1843_v2, %v624_v27 }
 0x1c0   : > { %v627_v29 = vmul.f32 %v1999_v28, %v1999_v28 }
 0x1c2   : > { %v2003_v30 = vand.u32 4294901760, %v627_v29 }
 0x1c4   : > { %v694_v31 = vsub.f32 %v627_v29, %v2003_v30  ;;  %1464 = vmatmul.mubr.f32.vlgmr.msra.gmra.mxu0 %v2003_v30 }
 0x1c5   : > { %1472 = vmatpush3.msra.mxu0 %v1697_v1  ;;  %1503 = vmatprep.mubr.msk.f32.mxu0 %vm1698_vm0, %v1696_v0 }
 0x1c6   : > { %v695_v32 = vand.u32 4294901760, %v694_v31  ;;  %1473 = vmatprep.subr.mxu0 %v1696_v0 }
 0x1c7   : > { %1474 = vmatpush3.msra.mxu0 %v1697_v1 }
 0x1c8   : > { %1475 = vmatprep.subr.mxu0 %v1696_v0  ;;  %v696_v33 = vsub.f32 %v694_v31, %v695_v32 }
 0x1c9   : > { %1476 = vmatpush3.msra.mxu0 %v1697_v1 }
 0x1ca   : > { %1477 = vmatprep.subr.mxu0 %v1696_v0  ;;  %v697_v34 = vand.u32 4294901760, %v696_v33 }
 0x1cb   : > { %1478 = vmatpush3.msra.mxu0 %v1697_v1 }
 0x1cc   : > { %1479 = vmatprep.subr.mxu0 %v1696_v0  ;;  %1459 = vmatmul.mubr.f32.vlgmr.msra.gmra.mxu1 %v697_v34 }
 0x1cd   : > { %1480 = vmatpush3.msra.mxu0 %v1697_v1  ;;  %1467 = vmatpush3.msra.mxu1 %v1696_v0 }
 0x1ce   : > { %1481 = vmatprep.subr.mxu0 %v1696_v0  ;;  %1468 = vmatprep.mubr.msk.f32.mxu1 %vm1698_vm0, %v1696_v0 }
 0x1cf   : > { %1482 = vmatpush3.msra.mxu0 %v1697_v1  ;;  %1506 = vmatprep.subr.mxu1 %v1696_v0 }
 0x1d0   : > { %1483 = vmatprep.subr.mxu0 %v1696_v0  ;;  %1469 = vmatmul.mubr.f32.vlgmr.msra.gmra.mxu1 %v694_v31 }
 0x1d1   : > { %1484 = vmatpush3.msra.mxu0 %v1697_v1  ;;  %1507 = vmatpush3.msra.mxu1 %v1696_v0 }
 0x1d2   : > { %1485 = vmatprep.subr.mxu0 %v1696_v0  ;;  %1508 = vmatprep.mubr.msk.f32.mxu1 %vm1698_vm0, %v1696_v0 }
 0x1d3   : > { %1486 = vmatpush3.msra.mxu0 %v1697_v1  ;;  %1511 = vmatprep.subr.mxu1 %v1696_v0 }
 0x1d4   : > { %1487 = vmatprep.subr.mxu0 %v1696_v0  ;;  %1509 = vmatmul.mubr.f32.vlgmr.msra.gmra.mxu1 %v2003_v30 }
 0x1d5   : > { %1488 = vmatpush3.msra.mxu0 %v1697_v1  ;;  %1512 = vmatpush3.msra.mxu1 %v1697_v1 }
 0x1d6   : > { %1489 = vmatprep.subr.mxu0 %v1696_v0  ;;  %1513 = vmatprep.subr.mxu1 %v1696_v0 }
 0x1d7   : > { %1490 = vmatpush3.msra.mxu0 %v1697_v1  ;;  %1514 = vmatpush3.msra.mxu1 %v1697_v1 }
 0x1d8   : > { %1491 = vmatprep.subr.mxu0 %v1696_v0  ;;  %1515 = vmatprep.subr.mxu1 %v1696_v0 }
 0x1d9   : > { %1492 = vmatpush3.msra.mxu0 %v1697_v1  ;;  %1516 = vmatpush3.msra.mxu1 %v1697_v1 }
 0x1da   : > { %1493 = vmatprep.subr.mxu0 %v1696_v0  ;;  %1517 = vmatprep.subr.mxu1 %v1696_v0 }
 0x1db   : > { %1494 = vmatpush3.msra.mxu0 %v1697_v1  ;;  %1518 = vmatpush3.msra.mxu1 %v1697_v1 }
 0x1dc   : > { %1495 = vmatprep.subr.mxu0 %v1696_v0  ;;  %1519 = vmatprep.subr.mxu1 %v1696_v0 }
 0x1dd   : > { %1496 = vmatpush3.msra.mxu0 %v1697_v1  ;;  %1520 = vmatpush3.msra.mxu1 %v1697_v1 }
 0x1de   : > { %1497 = vmatprep.subr.mxu0 %v1696_v0  ;;  %1521 = vmatprep.subr.mxu1 %v1696_v0 }
 0x1df   : > { %1498 = vmatpush3.msra.mxu0 %v1697_v1  ;;  %1522 = vmatpush3.msra.mxu1 %v1697_v1 }
 0x1e0   : > { %1499 = vmatprep.subr.mxu0 %v1696_v0  ;;  %1523 = vmatprep.subr.mxu1 %v1696_v0 }
 0x1e1   : > { %1500 = vmatpush3.msra.mxu0 %v1697_v1  ;;  %1524 = vmatpush3.msra.mxu1 %v1697_v1 }
 0x1e2   : > { %1501 = vmatprep.subr.mxu0 %v1696_v0  ;;  %1525 = vmatprep.subr.mxu1 %v1696_v0 }
 0x1e3   : > { %1502 = vmatpush3.msra.mxu0 %v1697_v1  ;;  %1526 = vmatpush3.msra.mxu1 %v1697_v1 }
 0x1e4   : > { %1504 = vmatmul.mubr.f32.vlgmr.msra.gmra.mxu0 %v695_v32  ;;  %1527 = vmatprep.subr.mxu1 %v1696_v0 }
 0x1e5   : > { %1528 = vmatpush3.msra.mxu1 %v1697_v1  ;;  %1543 = vmatprep.mubr.msk.f32.mxu1 %vm1698_vm0, %v1696_v0 }
 0x1e6   : > { %1529 = vmatprep.subr.mxu1 %v1696_v0 }
 0x1e7   : > { %1530 = vmatpush3.msra.mxu1 %v1697_v1 }
 0x1e8   : > { %1531 = vmatprep.subr.mxu1 %v1696_v0 }
 0x1e9   : > { %1532 = vmatpush3.msra.mxu1 %v1697_v1 }
 0x1ea   : > { %1533 = vmatprep.subr.mxu1 %v1696_v0 }
 0x1eb   : > { %1534 = vmatpush3.msra.mxu1 %v1697_v1 }
 0x1ec   : > { %1535 = vmatprep.subr.mxu1 %v1696_v0 }
 0x1ed   : > { %1536 = vmatpush3.msra.mxu1 %v1697_v1 }
 0x1ee   : > { %1537 = vmatprep.subr.mxu1 %v1696_v0 }
 0x1ef   : > { %1538 = vmatpush3.msra.mxu1 %v1697_v1 }
 0x1f0   : > { %1539 = vmatprep.subr.mxu1 %v1696_v0 }
 0x1f1   : > { %1540 = vmatpush3.msra.mxu1 %v1697_v1 }
 0x1f2   : > { %1541 = vmatprep.subr.mxu1 %v1696_v0 }
 0x1f3   : > { %1542 = vmatpush3.msra.mxu1 %v1697_v1 }
 0x1f4   : > { %1544 = vmatmul.mubr.f32.vlgmr.msra.gmra.mxu1 %v2003_v30 }
 0x284   : > { %v770_v35 = vpop.f32.mrf.mxu0 }
 0x286   : > { %v1465_v36 = vpop.f32.mrf.mxu0 }
 0x28c   : > { %v699_v37 = vpop.f32.mrf.mxu1 }
 0x28d   : > { %v771_v45 = vadd.f32 %v770_v35, %v699_v37 }
 0x28e   : > { %v1460_v38 = vpop.f32.mrf.mxu1 }
 0x290   : > { %v842_v39 = vpop.f32.mrf.mxu1 }
 0x291   : > { %v843_v46 = vadd.f32 %v842_v39, %v771_v45 }
 0x292   : > { %v1470_v40 = vpop.f32.mrf.mxu1 }
 0x294   : > { %v986_v41 = vpop.f32.mrf.mxu1 }
 0x296   : > { %v1510_v42 = vpop.f32.mrf.mxu1 }
 0x2a4   : > { %v915_v43 = vpop.f32.mrf.mxu0 }
 0x2a5   : > { %v916_v47 = vadd.f32 %v915_v43, %v843_v46 }
 0x2a6   : > { %v1505_v44 = vpop.f32.mrf.mxu0 }
 0x2a7   : > { %v987_v48 = vadd.f32 %v986_v41, %v916_v47 }
 0x2b4   : > { %v1057_v49 = vpop.f32.mrf.mxu1 }
 0x2b5   : > { %v1058_v50 = vadd.f32 %v1057_v49, %v987_v48 }
 0x2b6   : > { %v1545_v51 = vpop.f32.mrf.mxu1 }
 0x2b7   : > { %v1061_v52 = vmul.f32 0.007874016, %v1058_v50 }
 0x2b9   : > { %1597 = vrsqrt.f32 %v1061_v52  ;;  %vm1064_vm1 = vcmp.eq.f32.partialorder %v1061_v52, inf  ;;  %v1067_v55 = vand.u32 2147483648, %v1061_v52  ;;  %vm1066_vm2 = vcmp.eq.f32.partialorder %v1061_v52, 0.0 }
 0x2c6   : > { %v1598_v53 = vpop.eup %1597 }
 0x2c7   : > { %v1063_v54 = vmul.f32 %v1598_v53, %v1061_v52 }
 0x2c9   : > { %v1065_v56 = vsel %vm1064_vm1, %v1061_v52, %v1063_v54 }
 0x2ca   : > { %v1068_v57 = vsel %vm1066_vm2, %v1067_v55, %v1065_v56 }
 0x2cb   : > { %v1069_v58 = vadd.f32 1e-06, %v1068_v57 }
 0x2cd   : > { %1599 = vrcp.f32 %v1069_v58 }
 0x2da   : > { %v1600_v59 = vpop.eup %1599 }
 0x2db   : > { %1073 = vperm.xlu0 %1596, %v1600_v59  }
 0x356   : > { %v1074_v61 = vpop.permute.xlu0 %1073 }
 0x357   : > { %v1076_v62 = vmul.f32 %v1074_v61, %v1999_v28 }
 0x359   : > { %v1084_v0 = vmul.f32 %v1186_v60, %v1076_v62 }
 0x35b   : > { %v1092_v1 = vadd.f32 %v1187_v63, %v1084_v0 }
 0x35d   : > { %1093 = vst [vmem:[%s185_s10] sm:$0xff] %v1092_v1 }
 0x35e   : > { %1642 = shalt.err (!%p1639_p10)
}
 0x35f   : > { %s1643_s30 = scalar_lea.hbm %s1106_s20, 128  ;;  %s1647_s7 = scalar_lea.hbm %s2130_s3, 256 }
 0x360   : > { %p1644_p2 = scmp.ne.s32.totalorder %s1106_s20, %s1643_s30  ;;  %p1648_p7 = scmp.lt.s32.totalorder %s1106_s20, %s2130_s3 }
 0x361   : > { %p1649_p0 = scmp.lt.s32.totalorder %s1647_s7, %s1643_s30 }
 0x362   : > { %p1645_p4 = pnand %p1644_p2, %p2141_p12 }
 0x363   : > { %p1650_p6 = por %p1649_p0, %p1648_p7 }
 0x364   : > { %p1646_p9 = pneg %p1645_p4 }
 0x366   : > { %p1651_p11 = pnand %p1650_p6, %p1646_p9 }
 0x368   : > { %1654 = shalt.err (!%p1651_p11)
}
 0x369   : > { %1548 = dma.vmem_to_hbm [thread:$0]  (%p2141_p12), %s1109_s11, 128, %s1106_s20, %s1095_s22  }
 0x36a PF: > { %s1120_s6 = sand.u32 1, %s1681_s12   ;;  %p2142_p13 = scmp.ne.s32.totalorder %s2136_s25, 0 }
 0x36b   : > { %p2143_p1 = scmp.ge.s32.totalorder %s1693_s15, 2  ;;  %s1121_s8 = scalar_lea.sflag [#allocation4], %s1120_s6 }
 0x36d   : > { %p1555_p3 = pnand %p2143_p1, %p2142_p13 }
 0x36f   : > { %p1556_p5 = pneg %p1555_p3 }
 0x371   : > { %1676 = dma.done.wait (%p1556_p5), %s1121_s8, 128  }
 0x372   : > { %1678 = vsyncadd (%p1556_p5), %s1121_s8, 4294967168  ;;  %p16_p8 = scmp.ge.s32.totalorder %s1746_s18, 4   ;;  %s2144_s12 = smov %s1685_s13 }
 0x373   : > { %s2145_s13 = smov %s1689_s14  ;;  %s2146_s14 = smov %s1758_s21 }
 0x374   : > { %s2147_s15 = smov %s1746_s18  ;;  %18 = sbr.rel (!%p16_p8) target bundleno = 5 (0x5), region = 77 }
 0x379   :  { %1126 = vsyncpa [#allocation3], 1 }
 0x37a   :  { %1128 = vsyncpa [#allocation3 + $0x1], 1 }
 0x37b   :  { %1129 = vsyncpa [#allocation4], 1 }
 0x37c   :  { %1131 = vsyncpa [#allocation4 + $0x1], 1 }

// kernel: tpu_custom_call.1
= control target key start
LH: loop header
LB: loop body
LE: loop exit
PB: predicated region body
PF: predicated region fallthrough
CT: control target
= control target key end

     0   :  { %8 = vsyncpa [#allocation3], 0  ;;  %s634_s0 = inlined_call_operand.hbm [shape: f32[16,128], index: 0, kind: input, shape index: {}]   ;;  %s635_s1 = inlined_call_operand.vmem [shape: f32[1,128], index: 1, kind: input, shape index: {}]   ;;  %s636_s2 = inlined_call_operand.vmem [shape: f32[1,128], index: 2, kind: input, shape index: {}]   ;;  %s637_s3 = inlined_call_operand.hbm [shape: f32[16,128], index: 3, kind: output, shape index: {}]  }
   0x1   :  { %10 = vsyncpa [#allocation3 + $0x1], 0 }
   0x2   :  { %11 = vsyncpa [#allocation4], 0 }
   0x3   :  { %13 = vsyncpa [#allocation4 + $0x1], 0  ;;  %s487_s12 = smov 0   ;;  %s489_s13 = smov 0  }
   0x4   :  { %s491_s14 = smov 0   ;;  %s493_s15 = smov 0  }
   0x5 LB: > { %s508_s16 = sadd.s32 4294967295, %s463_s15   ;;  %s307_s17 = sadd.s32 4294967294, %s463_s15   ;;  %s463_s15 = sphi %s493_s15, %s654_s15   ;;  %s459_s14 = sphi %s491_s14, %s653_s14   ;;  %s455_s13 = sphi %s489_s13, %s652_s13   ;;  %s451_s12 = sphi %s487_s12, %s651_s12  }
   0x6   : > { %s512_s18 = sadd.s32 1, %s463_s15   ;;  %s26_s19 = sadd.s32 1, %s459_s14 }
   0x7   : > { %s23_s20 = ssub.s32 %s463_s15, %s512_s18  ;;  %p33_p0 = scmp.ne.s32.totalorder %s459_s14, %s455_s13 }
   0x8   : > { %p24_p1 = scmp.eq.s32.totalorder %s23_s20, 0  ;;  %p34_p2 = scmp.eq.s32.totalorder %s463_s15, 0 }
   0x9   : > { %p39_p3 = scmp.ne.s32.totalorder %s455_s13, %s451_s12  ;;  %p40_p4 = scmp.eq.s32.totalorder %s508_s16, 0 }
   0xa   : > { %s524_s21 = scalar_select %p24_p1, %s459_s14, %s26_s19  }
   0xb   : > { %p526_p5 = por %p34_p2, %p33_p0  ;;  %p530_p6 = por %p40_p4, %p39_p3 }
   0xc   : > { %p105_p7 = scmp.eq.s32.totalorder %s508_s16, 1  ;;  %p111_p8 = scmp.eq.s32.totalorder %s307_s17, 1 }
   0xd   : > { %s641_s23 = scalar_select %p530_p6, 1, 0 }
   0xe   : > { %p333_p10 = scmp.lt.s32.totalorder %s463_s15, 2  ;;  %p537_p11 = por %p105_p7, %p33_p0 }
   0xf   : > { %p541_p12 = por %p111_p8, %p39_p3  ;;  %s137_s26 = sand.u32 1, %s459_s14  }
  0x10   : > { %s642_s24 = scalar_select %p537_p11, 1, 0 }
  0x11   : > { %s643_s25 = scalar_select %p541_p12, 1, 0 }
  0x12   : > { %s311_s27 = sshll.u32 %s463_s15, 7  ;;  %s310_s28 = sshll.u32 %s137_s26, 3 }
  0x13   : > { %s550_s4 = scalar_lea.hbm %s634_s0, %s311_s27  ;;  %s141_s5 = scalar_lea.vmem [#allocation2], %s310_s28 }
  0x14   : > { %s148_s6 = sshll.u32 %s141_s5, 4  ;;  %p554_p13 = pnand %p333_p10, %p526_p5  ;;  %s558_s6 = int_to_ptr.vmem [resolvable:$true] %s148_s6 }
  0x15   : > { %s138_s8 = scalar_lea.sflag [#allocation3], %s137_s26  ;;  %s371_s9 = scalar_lea.hbm %s550_s4, 128 }
  0x16   : > { %p372_p2 = scmp.ne.s32.totalorder %s550_s4, %s371_s9  ;;  %p373_p3 = pneg %p554_p13 }
  0x17   : > { %s376_s17 = scalar_lea.hbm %s634_s0, 256  ;;  %p377_p5 = scmp.lt.s32.totalorder %s550_s4, %s634_s0 }
  0x18   : > { %p374_p4 = pnand %p373_p3, %p372_p2  ;;  %p378_p8 = scmp.lt.s32.totalorder %s376_s17, %s371_s9 }
  0x1a   : > { %p375_p7 = pneg %p374_p4  ;;  %p379_p10 = por %p378_p8, %p377_p5 }
  0x1c   : > { %p380_p9 = pnand %p379_p10, %p375_p7 }
  0x1e   : > { %383 = shalt.err (!%p380_p9)
}
  0x1f   : > { %s384_s22 = scalar_lea.vmem %s558_s6, 128  ;;  %s465_s26 = smov [#allocation2]  }
  0x20   : > { %p385_p0 = scmp.ne.s32.totalorder %s558_s6, %s384_s22  ;;  %s389_s27 = sshll.u32 %s465_s26, 4  ;;  %s390_s27 = int_to_ptr.vmem [resolvable:$false] %s389_s27 }
  0x21   : > { %s391_s28 = scalar_lea.vmem %s390_s27, 256  ;;  %p392_p4 = scmp.lt.s32.totalorder %s558_s6, %s390_s27 }
  0x22   : > { %p387_p1 = pnand %p385_p0, %p373_p3  ;;  %p393_p12 = scmp.lt.s32.totalorder %s391_s28, %s384_s22 }
  0x24   : > { %p388_p2 = pneg %p387_p1  ;;  %p394_p11 = por %p393_p12, %p392_p4 }
  0x26   : > { %p395_p6 = pnand %p394_p11, %p388_p2 }
  0x28   : > { %398 = shalt.err (!%p395_p6)
}
  0x29   : > { %328 = dma.hbm_to_vmem [thread:$0]  (!%p554_p13), %s550_s4, 128, %s558_s6, %s138_s8  }
  0x2a   : > { %p645_p9 = scmp.lt.s32.totalorder %s463_s15, 3  ;;  %p646_p7 = scmp.ge.s32.totalorder %s463_s15, 1 }
  0x2c   : > { %p154_p0 = pnand %p646_p7, %p645_p9 }
  0x2d   : > { %s585_s29 = sand.u32 (!%p154_p0), 1, %s455_s13   ;;  %p647_p6 = scmp.ne.s32.totalorder (!%p154_p0), %s641_s23, 0 }
  0x2e   : > { %157 = sbr.rel (%p154_p0) target bundleno = 390 (0x186), region = 32  ;;  %s313_s30 = sshll.u32 (!%p154_p0), %s585_s29, 3 }
  0x2f   : > { %s160_s5 = scalar_lea.sflag (!%p154_p0), [#allocation3], %s585_s29  ;;  %s163_s9 = scalar_lea.vmem (!%p154_p0), [#allocation2], %s313_s30 }
  0x33   : > { %442 = dma.done.wait (%p647_p6), %s160_s5, 128  }
  0x34   : > { %444 = vsyncadd (%p647_p6), %s160_s5, 4294967168  ;;  %v186_v0 = vld [vmem:[%s163_s9] sm:$0xff]  ;;  %s318_s8 = sshll.u32 %s508_s16, 7  ;;  %s185_s10 = scalar_lea.vmem [#allocation5], %s313_s30 }
  0x35   : > { %187 = vadd.xlane.f32.xlu0 %v186_v0  ;;  %v315_v14 = vld [vmem:[%s635_s1] ss:$0 sm:$0xff]  ;;  %s237_s11 = sshll.u32 %s185_s10, 4  ;;  %s235_s20 = scalar_lea.hbm %s637_s3, %s318_s8  ;;  %s238_s11 = int_to_ptr.vmem [resolvable:$true] %s237_s11 }
  0x36   : > { %v316_v16 = vld [vmem:[%s636_s2] ss:$0 sm:$0xff]  ;;  %s224_s22 = scalar_lea.sflag [#allocation4], %s585_s29  ;;  %s399_s26 = scalar_lea.vmem %s238_s11, 128 }
  0x37   : > { %p400_p11 = scmp.ne.s32.totalorder %s238_s11, %s399_s26  ;;  %p648_p12 = scmp.ne.s32.totalorder %s642_s24, 0 }
  0x38   : > { %s466_s27 = smov [#allocation5]  }
  0x39   : > { %p401_p13 = pnand %p400_p11, %p648_p12  ;;  %s403_s28 = sshll.u32 %s466_s27, 4  ;;  %s404_s28 = int_to_ptr.vmem [resolvable:$false] %s403_s28 }
  0x3a   : > { %s405_s16 = scalar_lea.vmem %s404_s28, 256  ;;  %p406_p3 = scmp.lt.s32.totalorder %s238_s11, %s404_s28 }
  0x3b   : > { %p402_p1 = pneg %p401_p13  ;;  %p407_p5 = scmp.lt.s32.totalorder %s405_s16, %s399_s26 }
  0x3d   : > { %p408_p8 = por %p407_p5, %p406_p3 }
  0x3f   : > { %p409_p10 = pnand %p408_p8, %p402_p1 }
  0xbe   : > { %v188_v1 = vpop.xlane.xlu0 %187 }
  0xbf   : > { %v190_v2 = vmul.f32 0.0078125, %v188_v1 }
  0xc1   : > { %v191_v3 = vsub.f32 %v186_v0, %v190_v2 }
  0xc3   : > { %v192_v4 = vmul.f32 %v191_v3, %v191_v3 }
  0xc5   : > { %193 = vadd.xlane.f32.xlu0 %v192_v4 }
 0x14e   : > { %v194_v5 = vpop.xlane.xlu0 %193 }
 0x14f   : > { %v195_v6 = vmul.f32 0.007874016, %v194_v5 }
 0x151   : > { %367 = vrsqrt.f32 %v195_v6  ;;  %vm198_vm0 = vcmp.eq.f32.partialorder %v195_v6, inf  ;;  %v201_v9 = vand.u32 2147483648, %v195_v6  ;;  %vm200_vm1 = vcmp.eq.f32.partialorder %v195_v6, 0.0 }
 0x15e   : > { %v368_v7 = vpop.eup %367 }
 0x15f   : > { %v197_v8 = vmul.f32 %v368_v7, %v195_v6 }
 0x161   : > { %v199_v10 = vsel %vm198_vm0, %v195_v6, %v197_v8 }
 0x162   : > { %v202_v11 = vsel %vm200_vm1, %v201_v9, %v199_v10 }
 0x163   : > { %v203_v12 = vadd.f32 1e-06, %v202_v11 }
 0x165   : > { %369 = vrcp.f32 %v203_v12 }
 0x172   : > { %v370_v13 = vpop.eup %369 }
 0x173   : > { %v205_v15 = vmul.f32 %v370_v13, %v191_v3 }
 0x175   : > { %v213_v17 = vmul.f32 %v315_v14, %v205_v15 }
 0x177   : > { %v221_v18 = vadd.f32 %v316_v16, %v213_v17 }
 0x179   : > { %222 = vst [vmem:[%s185_s10] sm:$0xff] %v221_v18 }
 0x17a   : > { %412 = shalt.err (!%p409_p10)
}
 0x17b   : > { %s413_s30 = scalar_lea.hbm %s235_s20, 128  ;;  %s417_s9 = scalar_lea.hbm %s637_s3, 256 }
 0x17c   : > { %p414_p2 = scmp.ne.s32.totalorder %s235_s20, %s413_s30  ;;  %p418_p7 = scmp.lt.s32.totalorder %s235_s20, %s637_s3 }
 0x17d   : > { %p419_p0 = scmp.lt.s32.totalorder %s417_s9, %s413_s30 }
 0x17e   : > { %p415_p4 = pnand %p414_p2, %p648_p12 }
 0x17f   : > { %p420_p6 = por %p419_p0, %p418_p7 }
 0x180   : > { %p416_p9 = pneg %p415_p4 }
 0x182   : > { %p421_p11 = pnand %p420_p6, %p416_p9 }
 0x184   : > { %424 = shalt.err (!%p421_p11)
}
 0x185   : > { %323 = dma.vmem_to_hbm [thread:$0]  (%p648_p12), %s238_s11, 128, %s235_s20, %s224_s22  }
 0x186 PF: > { %s249_s6 = sand.u32 1, %s451_s12   ;;  %p649_p13 = scmp.ne.s32.totalorder %s643_s25, 0 }
 0x187   : > { %p650_p1 = scmp.ge.s32.totalorder %s463_s15, 2  ;;  %s250_s7 = scalar_lea.sflag [#allocation4], %s249_s6 }
 0x189   : > { %p330_p3 = pnand %p650_p1, %p649_p13 }
 0x18b   : > { %p331_p5 = pneg %p330_p3 }
 0x18d   : > { %446 = dma.done.wait (%p331_p5), %s250_s7, 128  }
 0x18e   : > { %448 = vsyncadd (%p331_p5), %s250_s7, 4294967168  ;;  %p16_p8 = scmp.ge.s32.totalorder %s512_s18, 4   ;;  %s651_s12 = smov %s455_s13 }
 0x18f   : > { %s652_s13 = smov %s459_s14  ;;  %s653_s14 = smov %s524_s21 }
 0x190   : > { %s654_s15 = smov %s512_s18  ;;  %18 = sbr.rel (!%p16_p8) target bundleno = 5 (0x5), region = 77 }
 0x195   :  { %255 = vsyncpa [#allocation3], 1 }
 0x196   :  { %257 = vsyncpa [#allocation3 + $0x1], 1 }
 0x197   :  { %258 = vsyncpa [#allocation4], 1 }
 0x198   :  { %260 = vsyncpa [#allocation4 + $0x1], 1 }

</bundles_post_ra>
